<compile_context>
chip_gen: v5e
topology: v5e:2x2
jax: 0.10.0
libtpu: 0.0.40
codegen_flags: <defaults>
</compile_context>

<pallas_src>
import functools

import jax
import jax.numpy as jnp
from jax import lax
from jax.experimental import pallas as pl
from jax.experimental.pallas import tpu as pltpu

LANE = 128
MAX_BLOCK_ROWS = 1024  # 1024 x 128 f32 = 512 KiB per input block.


def _focal_elem(x, t, alpha, gamma):
    """Elementwise focal-loss term (matches the torch forward exactly)."""
    x = x.astype(jnp.float32)
    t = t.astype(jnp.float32)

    # Shared transcendental: e = exp(-|x|) feeds both the stable BCE term and
    # the numerically-stable sigmoid.
    e = jnp.exp(-jnp.abs(x))
    ce = jnp.maximum(x, 0.0) - x * t + jnp.log1p(e)
    inv = 1.0 / (1.0 + e)                      # exact; approx rcp would cost accuracy
    prob = jnp.where(x >= 0, inv, e * inv)     # == sigmoid(x)

    p_t = prob * t + (1.0 - prob) * (1.0 - t)
    one_minus_pt = 1.0 - p_t
    if float(gamma).is_integer() and gamma >= 0:
        w = jnp.ones_like(one_minus_pt)
        for _ in range(int(gamma)):            # VALU-only unrolled power
            w = w * one_minus_pt
    else:
        w = jnp.power(one_minus_pt, gamma)
    return alpha * w * ce


def _focal_partial_kernel(x_ref, t_ref, out_ref, *, alpha, gamma,
                          block_rows, n_valid, need_mask):
    """Per-tile partial sums: sublane-only reduce -> (1, 128) lane-dense out."""
    focal = _focal_elem(x_ref[...], t_ref[...], alpha, gamma)
    if need_mask:
        # Static n_valid: zero the lane-pad / ragged-tail elements in-register.
        row0 = pl.program_id(0) * block_rows
        rid = lax.broadcasted_iota(jnp.int32, focal.shape, 0) + row0
        cid = lax.broadcasted_iota(jnp.int32, focal.shape, 1)
        flat_idx = rid * LANE + cid            # fine for n < 2**31 elements
        focal = jnp.where(flat_idx < n_valid, focal, 0.0)
    out_ref[...] = jnp.sum(focal, axis=0, keepdims=True)


def _focal_none_kernel(x_ref, t_ref, out_ref, *, alpha, gamma):
    out_ref[...] = _focal_elem(x_ref[...], t_ref[...], alpha, gamma)


def focal_loss(logits, targets, alpha: float = 0.25, gamma: float = 2.0,
               reduction: str = "mean"):
    assert logits.shape == targets.shape
    n = int(logits.size)
    assert n > 0

    # Flatten, keep input dtype (cast to f32 happens inside the kernel so bf16
    # inputs only read 2 B/elem from HBM).  Only pad up to the next multiple
    # of 128 (<= 127 elems, negligible); ragged row blocks are handled by the
    # pipeline + in-kernel mask.
    x = logits.reshape(-1)
    t = targets.reshape(-1)
    lane_pad = (-n) % LANE
    if lane_pad:
        x = jnp.pad(x, (0, lane_pad))
        t = jnp.pad(t, (0, lane_pad))
    rows = (n + lane_pad) // LANE
    x = x.reshape(rows, LANE)
    t = t.reshape(rows, LANE)

    block_rows = rows if rows <= MAX_BLOCK_ROWS else MAX_BLOCK_ROWS
    num_tiles = -(-rows // block_rows)
    need_mask = (lane_pad != 0) or (rows % block_rows != 0)

    in_bytes = rows * LANE * (x.dtype.itemsize + t.dtype.itemsize)
    in_specs = [pl.BlockSpec((block_rows, LANE), lambda i: (i, 0))] * 2

    if reduction in ("mean", "sum"):
        kernel = functools.partial(
            _focal_partial_kernel, alpha=float(alpha), gamma=float(gamma),
            block_rows=block_rows, n_valid=n, need_mask=need_mask)
        cost = pl.CostEstimate(
            flops=20 * rows * LANE,
            transcendentals=3 * rows * LANE,
            bytes_accessed=in_bytes + num_tiles * LANE * 4,
        )
        partials = pl.pallas_call(
            kernel,
            out_shape=jax.ShapeDtypeStruct((num_tiles, LANE), jnp.float32),
            grid=(num_tiles,),
            in_specs=in_specs,
            out_specs=pl.BlockSpec((1, LANE), lambda i: (i, 0)),
            compiler_params=pltpu.CompilerParams(
                dimension_semantics=("parallel",)),
            cost_estimate=cost,
        )(x, t)
        total = jnp.sum(partials)               # tiny (num_tiles, 128) reduce in XLA
        if reduction == "mean":
            return total / jnp.float32(n)
        return total

    # reduction == 'none': elementwise kernel, reshape back to the input shape.
    kernel = functools.partial(_focal_none_kernel,
                               alpha=float(alpha), gamma=float(gamma))
    cost = pl.CostEstimate(
        flops=20 * rows * LANE,
        transcendentals=3 * rows * LANE,
        bytes_accessed=in_bytes + rows * LANE * 4,
    )
    out = pl.pallas_call(
        kernel,
        out_shape=jax.ShapeDtypeStruct((rows, LANE), jnp.float32),
        grid=(num_tiles,),
        in_specs=in_specs,
        out_specs=pl.BlockSpec((block_rows, LANE), lambda i: (i, 0)),
        compiler_params=pltpu.CompilerParams(
            dimension_semantics=("parallel",)),
        cost_estimate=cost,
    )(x, t)
    out = out.reshape(-1)
    if lane_pad:
        out = out[:n]
    return out.reshape(logits.shape).astype(logits.dtype)


def _reference_focal(logits, targets, alpha=0.25, gamma=2.0):
    x = logits.astype(jnp.float32)
    t = targets.astype(jnp.float32)
    prob = jax.nn.sigmoid(x)
    ce = jnp.maximum(x, 0.0) - x * t + jnp.log1p(jnp.exp(-jnp.abs(x)))
    p_t = prob * t + (1.0 - prob) * (1.0 - t)
    return alpha * (1.0 - p_t) ** gamma * ce


if __name__ == "__main__":
    key = jax.random.PRNGKey(0)
    k1, k2, k3, k4 = jax.random.split(key, 4)

    # NCHW dense-prediction-style inputs (2, 4, 16, 16).
    logits = jax.random.normal(k1, (2, 4, 16, 16), dtype=jnp.float32) * 2.0
    targets = (jax.random.uniform(k2, (2, 4, 16, 16)) > 0.5).astype(jnp.float32)

    loss = focal_loss(logits, targets, alpha=0.25, gamma=2.0, reduction="mean")
    loss = jax.block_until_ready(loss)
    ref = _reference_focal(logits, targets).mean()
    assert jnp.allclose(loss, ref, rtol=1e-5, atol=1e-6), (loss, ref)

    # Uneven size (exercises the in-kernel tail mask) + sum / none reductions.
    logits2 = jax.random.normal(k3, (3, 5, 7, 11), dtype=jnp.float32)
    targets2 = (jax.random.uniform(k4, (3, 5, 7, 11)) > 0.5).astype(jnp.float32)

    s = jax.block_until_ready(focal_loss(logits2, targets2, reduction="sum"))
    assert jnp.allclose(s, _reference_focal(logits2, targets2).sum(),
                        rtol=1e-5, atol=1e-5), s

    e = jax.block_until_ready(focal_loss(logits2, targets2, reduction="none"))
    assert jnp.allclose(e, _reference_focal(logits2, targets2),
                        rtol=1e-5, atol=1e-6)

    print("KERNEL_OK")
</pallas_src>

<mosaic_0001>
module attributes {stable_mosaic.version = 11 : i64} {
  func.func @_focal_partial_kernel(%arg0: i32, %arg1: memref<16x128xf32, #tpu.memory_space<vmem>>, %arg2: memref<16x128xf32, #tpu.memory_space<vmem>>, %arg3: memref<1x128xf32, #tpu.memory_space<vmem>>) attributes {dimension_semantics = [#tpu.dimension_semantics<parallel>], iteration_bounds = array<i64: 1>, scalar_prefetch = 0 : i64, scratch_operands = 0 : i64, tpu.core_type = #tpu.core_type<tc>, window_params = [{transform_indices = @transform_0, window_bounds = array<i64: 16, 128>}, {transform_indices = @transform_1, window_bounds = array<i64: 16, 128>}, {transform_indices = @transform_2, window_bounds = array<i64: 1, 128>}]} {
    %c0 = arith.constant 0 : index
    %c0_0 = arith.constant 0 : index
    %0 = vector.load %arg1[%c0, %c0_0] : memref<16x128xf32, #tpu.memory_space<vmem>>, vector<16x128xf32>
    %c0_1 = arith.constant 0 : index
    %c0_2 = arith.constant 0 : index
    %1 = vector.load %arg2[%c0_1, %c0_2] : memref<16x128xf32, #tpu.memory_space<vmem>>, vector<16x128xf32>
    %2 = math.absf %0 : vector<16x128xf32>
    %cst = arith.constant 0.000000e+00 : f32
    %3 = vector.broadcast %cst : f32 to vector<16x128xf32>
    %4 = arith.subf %3, %2 : vector<16x128xf32>
    %5 = math.exp %4 : vector<16x128xf32>
    %cst_3 = arith.constant 0.000000e+00 : f32
    %6 = vector.broadcast %cst_3 : f32 to vector<16x128xf32>
    %7 = arith.maximumf %0, %6 : vector<16x128xf32>
    %8 = arith.mulf %0, %1 : vector<16x128xf32>
    %9 = arith.subf %7, %8 : vector<16x128xf32>
    %10 = math.log1p %5 : vector<16x128xf32>
    %11 = arith.addf %9, %10 : vector<16x128xf32>
    %cst_4 = arith.constant 1.000000e+00 : f32
    %12 = vector.broadcast %cst_4 : f32 to vector<16x128xf32>
    %13 = arith.addf %12, %5 : vector<16x128xf32>
    %cst_5 = arith.constant 1.000000e+00 : f32
    %14 = vector.broadcast %cst_5 : f32 to vector<16x128xf32>
    %15 = arith.divf %14, %13 : vector<16x128xf32>
    %cst_6 = arith.constant 0.000000e+00 : f32
    %16 = vector.broadcast %cst_6 : f32 to vector<16x128xf32>
    %17 = arith.cmpf oge, %0, %16 : vector<16x128xf32>
    %18 = arith.mulf %5, %15 : vector<16x128xf32>
    %19 = arith.select %17, %15, %18 : vector<16x128xi1>, vector<16x128xf32>
    %20 = arith.mulf %19, %1 : vector<16x128xf32>
    %cst_7 = arith.constant 1.000000e+00 : f32
    %21 = vector.broadcast %cst_7 : f32 to vector<16x128xf32>
    %22 = arith.subf %21, %19 : vector<16x128xf32>
    %cst_8 = arith.constant 1.000000e+00 : f32
    %23 = vector.broadcast %cst_8 : f32 to vector<16x128xf32>
    %24 = arith.subf %23, %1 : vector<16x128xf32>
    %25 = arith.mulf %22, %24 : vector<16x128xf32>
    %26 = arith.addf %20, %25 : vector<16x128xf32>
    %cst_9 = arith.constant 1.000000e+00 : f32
    %27 = vector.broadcast %cst_9 : f32 to vector<16x128xf32>
    %28 = arith.subf %27, %26 : vector<16x128xf32>
    %cst_10 = arith.constant 1.000000e+00 : f32
    %29 = vector.broadcast %cst_10 : f32 to vector<16x128xf32>
    %30 = arith.mulf %29, %28 : vector<16x128xf32>
    %31 = arith.mulf %30, %28 : vector<16x128xf32>
    %cst_11 = arith.constant 2.500000e-01 : f32
    %32 = vector.broadcast %cst_11 : f32 to vector<16x128xf32>
    %33 = arith.mulf %32, %31 : vector<16x128xf32>
    %34 = arith.mulf %33, %11 : vector<16x128xf32>
    %cst_12 = arith.constant dense<0.000000e+00> : vector<128xf32>
    %35 = vector.multi_reduction <add>, %34, %cst_12 [0] : vector<16x128xf32> to vector<128xf32>
    %36 = vector.shape_cast %35 : vector<128xf32> to vector<1x128xf32>
    %c0_13 = arith.constant 0 : index
    %c0_14 = arith.constant 0 : index
    %37 = vector.load %arg3[%c0_13, %c0_14] : memref<1x128xf32, #tpu.memory_space<vmem>>, vector<1x128xf32>
    tpu.vector_store %arg3[%c0_13, %c0_14], %36 {strides = array<i32>} : memref<1x128xf32, #tpu.memory_space<vmem>>, vector<1x128xf32>,
    return
  }
  func.func @transform_0(%arg0: i32) -> (i32, i32) {
    %c0_i32 = arith.constant 0 : i32
    %c0_i32_0 = arith.constant 0 : i32
    return %arg0, %c0_i32 : i32, i32
  }
  func.func @transform_1(%arg0: i32) -> (i32, i32) {
    %c0_i32 = arith.constant 0 : i32
    %c0_i32_0 = arith.constant 0 : i32
    return %arg0, %c0_i32 : i32, i32
  }
  func.func @transform_2(%arg0: i32) -> (i32, i32) {
    %c0_i32 = arith.constant 0 : i32
    %c0_i32_0 = arith.constant 0 : i32
    return %arg0, %c0_i32 : i32, i32
  }
}

</mosaic_0001>

<bundles_post_ra>
// kernel: tpu_custom_call.1
= control target key start
LH: loop header
LB: loop body
LE: loop exit
PB: predicated region body
PF: predicated region fallthrough
CT: control target
= control target key end

     0   :  { %7 = vsyncpa [#allocation3], 0  ;;  %s320_s0 = inlined_call_operand.hbm [shape: f32[16,128], index: 0, kind: input, shape index: {}]   ;;  %s321_s1 = inlined_call_operand.hbm [shape: f32[16,128], index: 1, kind: input, shape index: {}]   ;;  %s322_s2 = inlined_call_operand.hbm [shape: f32[1,128], index: 2, kind: output, shape index: {}]  }
   0x1   :  { %8 = vsyncpa [#allocation6], 0 }
   0x2   :  { %9 = vsyncpa [#allocation4], 0  ;;  %s14_s11 = sshll.u32 %s320_s0, 4  ;;  %s259_s12 = smov [#allocation2]   ;;  %s15_s11 = int_to_ptr.hbm [resolvable:$true] %s14_s11 }
   0x3   :  { %s16_s13 = sshll.u32 %s259_s12, 4  ;;  %s27_s16 = sshll.u32 %s321_s1, 4  ;;  %s17_s13 = int_to_ptr.vmem [resolvable:$true] %s16_s13  ;;  %s28_s16 = int_to_ptr.hbm [resolvable:$true] %s27_s16 }
   0x4   :  { %s260_s17 = smov 128   ;;  %s261_s18 = smov 8  }
   0x5   :  { %22 = dma.hbm_to_vmem [thread:$0]  %s15_s11, 256, %s17_s13, [#allocation3], %s260_s17, %s260_s17, %s261_s18  }
   0x6   :  { %s262_s19 = smov [#allocation5]  }
   0x7   :  { %s29_s20 = sshll.u32 %s262_s19, 4  ;;  %s30_s20 = int_to_ptr.vmem [resolvable:$true] %s29_s20 }
   0x8   :  { %35 = dma.hbm_to_vmem [thread:$0]  %s28_s16, 256, %s30_s20, [#allocation6], %s260_s17, %s260_s17, %s261_s18  }
   0x9   :  { %253 = dma.done.wait [#allocation3], 256  }
   0xa   :  { %254 = vsyncadd [#allocation3], 4294967040 }
   0xb   :  { %255 = dma.done.wait [#allocation6], 256  }
   0xc   :  { %256 = vsyncadd [#allocation6], 4294967040  ;;  %v285_v0 = vld [vmem:[#allocation2] sm:$0xff]  ;;  %v287_v1 = vld [vmem:[#allocation2 + $0x8] sm:$0xff]  ;;  %s263_s0 = smov [#allocation7]   ;;  %s153_s23 = sshll.u32 %s322_s2, 4  ;;  %s154_s23 = int_to_ptr.hbm [resolvable:$true] %s153_s23 }
   0xd   :  { %v48_v2 = vand.u32 2147483647, %v285_v0  ;;  %v49_v3 = vand.u32 2147483647, %v287_v1  ;;  %v46_v31 = vld [vmem:[#allocation5] sm:$0xff]  ;;  %v56_v32 = vmax.f32 %v285_v0, 0.0 }
   0xe   :  { %v47_v34 = vld [vmem:[#allocation5 + $0x8] sm:$0xff]  ;;  %v58_v35 = vmul.f32 %v46_v31, %v285_v0  ;;  %vm114_vm8 = vcmp.ge.f32.partialorder %v285_v0, 0.0  ;;  %vm115_vm9 = vcmp.ge.f32.partialorder %v287_v1, 0.0  ;;  %v124_v45 = vsub.f32 1.0, %v46_v31  ;;  %s151_s1 = sshll.u32 %s263_s0, 4  ;;  %s152_s1 = int_to_ptr.vmem [resolvable:$true] %s151_s1 }
   0xf   :  { %v50_v4 = vsub.f32 0.0, %v48_v2  ;;  %v51_v5 = vsub.f32 0.0, %v49_v3  ;;  %v57_v47 = vmax.f32 %v287_v1, 0.0  ;;  %v125_v50 = vsub.f32 1.0, %v47_v34 }
  0x10   :  { %v59_v51 = vmul.f32 %v47_v34, %v287_v1  ;;  %v60_v63 = vsub.f32 %v56_v32, %v58_v35 }
  0x11   :  { %v52_v6 = vmul.f32 1.442695, %v50_v4  ;;  %v54_v7 = vmul.f32 1.442695, %v51_v5 }
  0x12   :  { %v61_v2 = vsub.f32 %v57_v47, %v59_v51 }
  0x13   :  { %169 = vpow2.f32 %v52_v6 }
  0x14   :  { %171 = vpow2.f32 %v54_v7 }
  0x19   :  { %v291_v8 = vpop.eup %169 }
  0x1a   :  { %v293_v9 = vpop.eup %171  ;;  %v62_v10 = vadd.f32 1.0, %v291_v8  ;;  %v65_v23 = vmul.f32 -0.5, %v291_v8  ;;  %v68_v42 = vand.u32 2147483647, %v291_v8 }
  0x1b   :  { %v71_v11 = vadd.f32 1.0, %v293_v9  ;;  %v74_v29 = vmul.f32 -0.5, %v293_v9  ;;  %v77_v48 = vand.u32 2147483647, %v293_v9 }
  0x1c   :  { %173 = vrcp.f32 %v62_v10  ;;  %vm89_vm0 = vweird.f32 %v62_v10  ;;  %v95_v15 = vand.u32 2147483648, %v62_v10  ;;  %v93_v18 = vand.u32 2147483647, %v62_v10 }
  0x1d   :  { %175 = vrcp.f32 %v71_v11  ;;  %v110_v19 = vand.u32 2147483648, %v71_v11  ;;  %vm104_vm2 = vweird.f32 %v71_v11  ;;  %v108_v21 = vand.u32 2147483647, %v71_v11 }
  0x1e   :  { %177 = vlog2.f32 %v62_v10  ;;  %v96_v25 = vor.u32 1.1754944e-38, %v95_v15  ;;  %vm94_vm5 = vcmp.eq.f32.partialorder %v93_v18, 8.507059e+37  ;;  %v66_v38 = vadd.f32 1.0, %v65_v23 }
  0x1f   :  { %179 = vlog2.f32 %v71_v11  ;;  %v111_v28 = vor.u32 1.1754944e-38, %v110_v19  ;;  %vm109_vm7 = vcmp.eq.f32.partialorder %v108_v21, 8.507059e+37  ;;  %v75_v43 = vadd.f32 1.0, %v74_v29 }
  0x20   :  { %v67_v56 = vmul.f32 %v291_v8, %v66_v38  ;;  %vm69_vm10 = vcmp.lt.f32.partialorder %v68_v42, 0.0004427343  ;;  %vm78_vm11 = vcmp.lt.f32.partialorder %v77_v48, 0.0004427343 }
  0x21   :  { %v76_v60 = vmul.f32 %v293_v9, %v75_v43 }
  0x22   :  { %v174_v12 = vpop.eup %173 }
  0x23   :  { %v176_v13 = vpop.eup %175  ;;  %v85_v14 = vmul.f32 %v174_v12, %v62_v10  ;;  %vm90_vm1 = vweird.f32 %v174_v12 }
  0x24   :  { %v100_v16 = vmul.f32 %v176_v13, %v71_v11  ;;  %vm105_vm3 = vweird.f32 %v176_v13  ;;  %vm298_vm4 = vmor %vm89_vm0, %vm90_vm1  ;;  %v178_v41 = vpop.eup %177 }
  0x25   :  { %v86_v17 = vsub.f32 1.0, %v85_v14  ;;  %vm106_vm6 = vmor %vm104_vm2, %vm105_vm3  ;;  %v180_v46 = vpop.eup %179  ;;  %v64_v55 = vmul.f32 0.6931472, %v178_v41 }
  0x26   :  { %v101_v20 = vsub.f32 1.0, %v100_v16  ;;  %v73_v59 = vmul.f32 0.6931472, %v180_v46 }
  0x27   :  { %v87_v22 = vmul.f32 %v174_v12, %v86_v17  ;;  %v70_v3 = vsel %vm69_vm10, %v67_v56, %v64_v55 }
  0x28   :  { %v102_v26 = vmul.f32 %v176_v13, %v101_v20  ;;  %v79_v4 = vsel %vm78_vm11, %v76_v60, %v73_v59  ;;  %v80_v7 = vadd.f32 %v70_v3, %v60_v63 }
  0x29   :  { %v88_v27 = vadd.f32 %v174_v12, %v87_v22 }
  0x2a   :  { %v103_v30 = vadd.f32 %v176_v13, %v102_v26 }
  0x2b   :  { %v92_v33 = vsel %vm298_vm4, %v174_v12, %v88_v27 }
  0x2c   :  { %v97_v36 = vsel %vm94_vm5, %v96_v25, %v92_v33  ;;  %v107_v37 = vsel %vm106_vm6, %v176_v13, %v103_v30 }
  0x2d   :  { %v112_v39 = vsel %vm109_vm7, %v111_v28, %v107_v37  ;;  %v116_v40 = vmul.f32 %v291_v8, %v97_v36  ;;  %v81_v8 = vadd.f32 %v79_v4, %v61_v2 }
  0x2e   :  { %v117_v44 = vmul.f32 %v293_v9, %v112_v39 }
  0x2f   :  { %v118_v49 = vsel %vm114_vm8, %v97_v36, %v116_v40 }
  0x30   :  { %v119_v52 = vsel %vm115_vm9, %v112_v39, %v117_v44  ;;  %v120_v53 = vmul.f32 %v118_v49, %v46_v31  ;;  %v122_v54 = vsub.f32 1.0, %v118_v49 }
  0x31   :  { %v121_v57 = vmul.f32 %v119_v52, %v47_v34  ;;  %v123_v58 = vsub.f32 1.0, %v119_v52 }
  0x32   :  { %v126_v61 = vmul.f32 %v124_v45, %v122_v54 }
  0x33   :  { %v127_v62 = vmul.f32 %v125_v50, %v123_v58 }
  0x34   :  { %v128_v0 = vadd.f32 %v126_v61, %v120_v53 }
  0x35   :  { %v129_v1 = vadd.f32 %v127_v62, %v121_v57 }
  0x36   :  { %v130_v5 = vsub.f32 1.0, %v128_v0 }
  0x37   :  { %v131_v6 = vsub.f32 1.0, %v129_v1 }
  0x38   :  { %v132_v10 = vmul.f32 %v130_v5, %v130_v5 }
  0x39   :  { %v133_v11 = vmul.f32 %v131_v6, %v131_v6 }
  0x3a   :  { %v134_v12 = vmul.f32 0.25, %v132_v10 }
  0x3b   :  { %v135_v13 = vmul.f32 0.25, %v133_v11 }
  0x3c   :  { %v136_v14 = vmul.f32 %v134_v12, %v80_v7 }
  0x3d   :  { %v137_v15 = vmul.f32 %v135_v13, %v81_v8 }
  0x3f   :  { %v138_v9 = vadd.f32 %v137_v15, %v136_v14 }
  0x41   :  { %v139_v16 = vrot.slane %v138_v9, 4 }
  0x43   :  { %v140_v17 = vadd.f32 %v139_v16, %v138_v9 }
  0x45   :  { %v141_v18 = vrot.slane %v140_v17, 2 }
  0x47   :  { %v142_v19 = vadd.f32 %v141_v18, %v140_v17 }
  0x49   :  { %v143_v20 = vrot.slane %v142_v19, 1 }
  0x4b   :  { %v144_v21 = vadd.f32 %v143_v20, %v142_v19 }
  0x4d   :  { %145 = vst [vmem:[#allocation7] sm:$0x1] %v144_v21 }
  0x4e   :  { %156 = dma.vmem_to_hbm [thread:$0]  %s152_s1, 16, %s154_s23, [#allocation4]  }
  0x4f   :  { %257 = dma.done.wait [#allocation4], 16  }
  0x50   :  { %258 = vsyncadd [#allocation4], 4294967280 }
  0x51   :  { %161 = vsyncpa [#allocation3], 1 }
  0x52   :  { %162 = vsyncpa [#allocation6], 1 }
  0x53   :  { %163 = vsyncpa [#allocation4], 1 }

</bundles_post_ra>
